<compile_context>
chip_gen: v5e
topology: v5e:2x2
jax: 0.10.0
libtpu: 0.0.40
codegen_flags: <defaults>
</compile_context>

<pallas_src>
import functools

import jax
import jax.numpy as jnp
from jax.experimental import pallas as pl
from jax.experimental.pallas import tpu as pltpu

LANE = 128  # TPU lane width; outputs are padded to this for dense (unmasked) stores.


def _classifier_kernel(patches_ref, wc_ref, bc_ref, wfc_ref, bfc_ref,
                       logits_ref, emb_ref):
    # patches_ref: (TB, HW, K)   im2col patches for TB images
    # wc_ref:      (K, 128)      conv weight, flattened (kh,kw,c_in)->K, lane-padded over C_out
    # bc_ref:      (1, 128)      conv bias (lane-padded with zeros)
    # wfc_ref:     (128, 128)    fc weight (C_out x num_classes, zero-padded both ways)
    # bfc_ref:     (1, 128)      fc bias (lane-padded with zeros)
    # logits_ref:  (TB, 128)     lanes [0:num_classes] hold real logits
    # emb_ref:     (TB, 128)     lanes [0:C_out] hold real embedding
    tb, hw, k = patches_ref.shape
    p = patches_ref[...].reshape(tb * hw, k)                   # merge batch into sublanes
    # One batched conv matmul on the MXU; result is 128 lanes wide (dense vregs).
    conv = jnp.dot(p, wc_ref[...], preferred_element_type=jnp.float32)
    conv = jnp.maximum(conv + bc_ref[...], 0.0)                # bias + ReLU (padded lanes stay 0)
    # Global average pool per image: sublane-axis reduce over HW.
    emb = jnp.mean(conv.reshape(tb, hw, LANE), axis=1)         # (TB, 128)
    emb_ref[...] = emb
    # Batched classifier head: one MXU matmul per block (not per image).
    logits_ref[...] = (
        jnp.dot(emb, wfc_ref[...], preferred_element_type=jnp.float32)
        + bfc_ref[...])


@functools.partial(jax.jit, static_argnames=("output_emb", "block_batch"))
def classifier_wrapper_forward(x_nchw, w_conv, b_conv, w_fc, b_fc,
                               output_emb=False, block_batch=8):
    """x_nchw: (N, C_in, H, W) float32; conv 3x3 pad=1 stride=1."""
    N, C_in, H, W = x_nchw.shape
    KH = KW = 3
    C_out = w_conv.shape[0]
    num_classes = w_fc.shape[0]
    assert C_out <= LANE and num_classes <= LANE

    # ---- glue (plain JAX): NCHW -> NHWC, pad, im2col ----
    # TODO(synk): for v5e, build the 9 shifted windows inside the kernel from the
    # padded NHWC image instead of materializing im2col patches in HBM (9x bytes).
    x = jnp.transpose(x_nchw, (0, 2, 3, 1))                          # (N, H, W, C_in)
    xp = jnp.pad(x, ((0, 0), (1, 1), (1, 1), (0, 0)))                # (N, H+2, W+2, C_in)
    patches = jnp.stack(
        [xp[:, kh:kh + H, kw:kw + W, :] for kh in range(KH) for kw in range(KW)],
        axis=3)                                                      # (N, H, W, 9, C_in)
    K = KH * KW * C_in
    patches = patches.reshape(N, H * W, K).astype(jnp.float32)       # (N, H*W, K)

    # ---- batch multiple images per grid step ----
    TB = int(min(block_batch, N))
    if TB < N:
        TB = max(8, (TB // 8) * 8)   # keep output sublane blocks 8-aligned when tiling
    N_pad = ((N + TB - 1) // TB) * TB
    if N_pad != N:
        patches = jnp.pad(patches, ((0, N_pad - N), (0, 0), (0, 0)))

    # ---- lane-pad weights/biases so every matmul output & store is 128-lane dense ----
    wc = jnp.transpose(w_conv, (2, 3, 1, 0)).reshape(K, C_out).astype(jnp.float32)
    wc = jnp.pad(wc, ((0, 0), (0, LANE - C_out)))                    # (K, 128)
    bc = jnp.pad(b_conv.astype(jnp.float32), (0, LANE - C_out)).reshape(1, LANE)
    wfc = jnp.transpose(w_fc, (1, 0)).astype(jnp.float32)            # (C_out, num_classes)
    wfc = jnp.pad(wfc, ((0, LANE - C_out), (0, LANE - num_classes))) # (128, 128)
    bfc = jnp.pad(b_fc.astype(jnp.float32), (0, LANE - num_classes)).reshape(1, LANE)

    HW = H * W
    out_shapes = (
        jax.ShapeDtypeStruct((N_pad, LANE), jnp.float32),   # padded logits slab
        jax.ShapeDtypeStruct((N_pad, LANE), jnp.float32),   # padded embedding slab
    )
    grid_spec = pltpu.PrefetchScalarGridSpec(
        num_scalar_prefetch=0,
        grid=(N_pad // TB,),
        in_specs=[
            pl.BlockSpec((TB, HW, K), lambda n: (n, 0, 0)),
            pl.BlockSpec((K, LANE), lambda n: (0, 0)),       # VMEM-resident weights
            pl.BlockSpec((1, LANE), lambda n: (0, 0)),
            pl.BlockSpec((LANE, LANE), lambda n: (0, 0)),
            pl.BlockSpec((1, LANE), lambda n: (0, 0)),
        ],
        out_specs=[
            pl.BlockSpec((TB, LANE), lambda n: (n, 0)),
            pl.BlockSpec((TB, LANE), lambda n: (n, 0)),
        ],
    )
    logits_pad, emb_pad = pl.pallas_call(
        _classifier_kernel,
        out_shape=out_shapes,
        grid_spec=grid_spec,
        compiler_params=pltpu.CompilerParams(
            dimension_semantics=("parallel",)),
    )(patches, wc, bc, wfc, bfc)

    # Free wrapper-side slicing back to the true shapes.
    logits = logits_pad[:N, :num_classes]
    emb = emb_pad[:N, :C_out]
    if output_emb:
        return logits, emb
    return logits


def _reference_forward(x_nchw, w_conv, b_conv, w_fc, b_fc):
    """Pure-JAX reference for correctness checking."""
    y = jax.lax.conv_general_dilated(
        x_nchw, w_conv, window_strides=(1, 1), padding="SAME",
        dimension_numbers=("NCHW", "OIHW", "NCHW"))
    y = y + b_conv[None, :, None, None]
    y = jnp.maximum(y, 0.0)
    emb = jnp.mean(y, axis=(2, 3))                  # (N, C_out)
    logits = emb @ w_fc.T + b_fc
    return logits, emb


if __name__ == "__main__":
    # Small shapes consistent with the module: batch=2, channels=4, spatial=16.
    N, C_in, H, W = 2, 4, 16, 16
    C_out = 8
    num_classes = 10

    key = jax.random.PRNGKey(0)
    k0, k1, k2, k3, k4 = jax.random.split(key, 5)
    x = jax.random.normal(k0, (N, C_in, H, W), jnp.float32)
    w_conv = jax.random.normal(k1, (C_out, C_in, 3, 3), jnp.float32) * 0.1
    b_conv = jax.random.normal(k2, (C_out,), jnp.float32) * 0.1
    w_fc = jax.random.normal(k3, (num_classes, C_out), jnp.float32) * 0.1
    b_fc = jax.random.normal(k4, (num_classes,), jnp.float32) * 0.1

    logits, emb = classifier_wrapper_forward(x, w_conv, b_conv, w_fc, b_fc,
                                             output_emb=True)
    logits = jax.block_until_ready(logits)
    emb = jax.block_until_ready(emb)

    ref_logits, ref_emb = _reference_forward(x, w_conv, b_conv, w_fc, b_fc)
    assert jnp.allclose(logits, ref_logits, atol=1e-4, rtol=1e-4)
    assert jnp.allclose(emb, ref_emb, atol=1e-4, rtol=1e-4)
    assert logits.shape == (N, num_classes) and emb.shape == (N, C_out)

    print("KERNEL_OK")
</pallas_src>

<mosaic_0001>
module attributes {stable_mosaic.version = 11 : i64} {
  func.func @_classifier_kernel(%arg0: i32, %arg1: memref<2x256x36xf32, #tpu.memory_space<vmem>>, %arg2: memref<36x128xf32, #tpu.memory_space<vmem>>, %arg3: memref<1x128xf32, #tpu.memory_space<vmem>>, %arg4: memref<128x128xf32, #tpu.memory_space<vmem>>, %arg5: memref<1x128xf32, #tpu.memory_space<vmem>>, %arg6: memref<2x128xf32, #tpu.memory_space<vmem>>, %arg7: memref<2x128xf32, #tpu.memory_space<vmem>>) attributes {dimension_semantics = [#tpu.dimension_semantics<parallel>], iteration_bounds = array<i64: 1>, scalar_prefetch = 0 : i64, scratch_operands = 0 : i64, tpu.core_type = #tpu.core_type<tc>, window_params = [{transform_indices = @transform_0, window_bounds = array<i64: 2, 256, 36>}, {pipeline_mode = #tpu.pipeline_mode<synchronous>, transform_indices = @transform_1, window_bounds = array<i64: 36, 128>}, {pipeline_mode = #tpu.pipeline_mode<synchronous>, transform_indices = @transform_2, window_bounds = array<i64: 1, 128>}, {pipeline_mode = #tpu.pipeline_mode<synchronous>, transform_indices = @transform_3, window_bounds = array<i64: 128, 128>}, {pipeline_mode = #tpu.pipeline_mode<synchronous>, transform_indices = @transform_4, window_bounds = array<i64: 1, 128>}, {transform_indices = @transform_5, window_bounds = array<i64: 2, 128>}, {transform_indices = @transform_6, window_bounds = array<i64: 2, 128>}]} {
    %c0 = arith.constant 0 : index
    %c0_0 = arith.constant 0 : index
    %c0_1 = arith.constant 0 : index
    %0 = vector.load %arg1[%c0, %c0_0, %c0_1] : memref<2x256x36xf32, #tpu.memory_space<vmem>>, vector<2x256x36xf32>
    %1 = vector.shape_cast %0 : vector<2x256x36xf32> to vector<512x36xf32>
    %c0_2 = arith.constant 0 : index
    %c0_3 = arith.constant 0 : index
    %2 = vector.load %arg2[%c0_2, %c0_3] : memref<36x128xf32, #tpu.memory_space<vmem>>, vector<36x128xf32>
    %cst = arith.constant dense<0.000000e+00> : vector<512x128xf32>
    %3 = tpu.matmul %1, %2, %cst {dimension_numbers = #tpu.dot_dimension_numbers<[1], [0], [0], [1], [0, 0, 1, 1], [], []>} : vector<512x36xf32>, vector<36x128xf32>, vector<512x128xf32> -> vector<512x128xf32>
    %c0_4 = arith.constant 0 : index
    %c0_5 = arith.constant 0 : index
    %4 = vector.load %arg3[%c0_4, %c0_5] : memref<1x128xf32, #tpu.memory_space<vmem>>, vector<1x128xf32>
    %5 = vector.broadcast %4 : vector<1x128xf32> to vector<512x128xf32>
    %6 = arith.addf %3, %5 : vector<512x128xf32>
    %cst_6 = arith.constant 0.000000e+00 : f32
    %7 = vector.broadcast %cst_6 : f32 to vector<512x128xf32>
    %8 = arith.maximumf %6, %7 : vector<512x128xf32>
    %9 = vector.shape_cast %8 : vector<512x128xf32> to vector<2x256x128xf32>
    %cst_7 = arith.constant dense<0.000000e+00> : vector<2x128xf32>
    %10 = vector.multi_reduction <add>, %9, %cst_7 [1] : vector<2x256x128xf32> to vector<2x128xf32>
    %cst_8 = arith.constant 2.560000e+02 : f32
    %11 = vector.broadcast %cst_8 : f32 to vector<2x128xf32>
    %12 = arith.divf %10, %11 : vector<2x128xf32>
    %c0_9 = arith.constant 0 : index
    %c0_10 = arith.constant 0 : index
    %13 = vector.load %arg7[%c0_9, %c0_10] : memref<2x128xf32, #tpu.memory_space<vmem>>, vector<2x128xf32>
    tpu.vector_store %arg7[%c0_9, %c0_10], %12 {strides = array<i32>} : memref<2x128xf32, #tpu.memory_space<vmem>>, vector<2x128xf32>,
    %c0_11 = arith.constant 0 : index
    %c0_12 = arith.constant 0 : index
    %14 = vector.load %arg4[%c0_11, %c0_12] : memref<128x128xf32, #tpu.memory_space<vmem>>, vector<128x128xf32>
    %cst_13 = arith.constant dense<0.000000e+00> : vector<2x128xf32>
    %15 = tpu.matmul %12, %14, %cst_13 {dimension_numbers = #tpu.dot_dimension_numbers<[1], [0], [0], [1], [0, 0, 1, 1], [], []>} : vector<2x128xf32>, vector<128x128xf32>, vector<2x128xf32> -> vector<2x128xf32>
    %c0_14 = arith.constant 0 : index
    %c0_15 = arith.constant 0 : index
    %16 = vector.load %arg5[%c0_14, %c0_15] : memref<1x128xf32, #tpu.memory_space<vmem>>, vector<1x128xf32>
    %17 = vector.broadcast %16 : vector<1x128xf32> to vector<2x128xf32>
    %18 = arith.addf %15, %17 : vector<2x128xf32>
    %c0_16 = arith.constant 0 : index
    %c0_17 = arith.constant 0 : index
    %19 = vector.load %arg6[%c0_16, %c0_17] : memref<2x128xf32, #tpu.memory_space<vmem>>, vector<2x128xf32>
    tpu.vector_store %arg6[%c0_16, %c0_17], %18 {strides = array<i32>} : memref<2x128xf32, #tpu.memory_space<vmem>>, vector<2x128xf32>,
    return
  }
  func.func @transform_0(%arg0: i32) -> (i32, i32, i32) {
    %c0_i32 = arith.constant 0 : i32
    %c0_i32_0 = arith.constant 0 : i32
    %c0_i32_1 = arith.constant 0 : i32
    return %arg0, %c0_i32, %c0_i32_0 : i32, i32, i32
  }
  func.func @transform_1(%arg0: i32) -> (i32, i32) {
    %c0_i32 = arith.constant 0 : i32
    %c0_i32_0 = arith.constant 0 : i32
    %c0_i32_1 = arith.constant 0 : i32
    return %c0_i32, %c0_i32_0 : i32, i32
  }
  func.func @transform_2(%arg0: i32) -> (i32, i32) {
    %c0_i32 = arith.constant 0 : i32
    %c0_i32_0 = arith.constant 0 : i32
    %c0_i32_1 = arith.constant 0 : i32
    return %c0_i32, %c0_i32_0 : i32, i32
  }
  func.func @transform_3(%arg0: i32) -> (i32, i32) {
    %c0_i32 = arith.constant 0 : i32
    %c0_i32_0 = arith.constant 0 : i32
    %c0_i32_1 = arith.constant 0 : i32
    return %c0_i32, %c0_i32_0 : i32, i32
  }
  func.func @transform_4(%arg0: i32) -> (i32, i32) {
    %c0_i32 = arith.constant 0 : i32
    %c0_i32_0 = arith.constant 0 : i32
    %c0_i32_1 = arith.constant 0 : i32
    return %c0_i32, %c0_i32_0 : i32, i32
  }
  func.func @transform_5(%arg0: i32) -> (i32, i32) {
    %c0_i32 = arith.constant 0 : i32
    %c0_i32_0 = arith.constant 0 : i32
    return %arg0, %c0_i32 : i32, i32
  }
  func.func @transform_6(%arg0: i32) -> (i32, i32) {
    %c0_i32 = arith.constant 0 : i32
    %c0_i32_0 = arith.constant 0 : i32
    return %arg0, %c0_i32 : i32, i32
  }
}

</mosaic_0001>

<bundles_post_ra>
// kernel: classifier_wrapper_forward.1
= control target key start
LH: loop header
LB: loop body
LE: loop exit
PB: predicated region body
PF: predicated region fallthrough
CT: control target
= control target key end

     0   :  { %12 = vsyncpa [#allocation3], 0  ;;  %vm290_vm0 = vcmask 1043456   ;;  %s1390_s0 = inlined_call_operand.vmem [shape: f32[2,256,36], index: 0, kind: input, shape index: {}]   ;;  %s1391_s1 = inlined_call_operand.vmem [shape: f32[36,128], index: 1, kind: input, shape index: {}]   ;;  %s1392_s2 = inlined_call_operand.vmem [shape: f32[1,128], index: 2, kind: input, shape index: {}]   ;;  %s1393_s3 = inlined_call_operand.vmem [shape: f32[128,128], index: 3, kind: input, shape index: {}]   ;;  %s1394_s4 = inlined_call_operand.vmem [shape: f32[1,128], index: 4, kind: input, shape index: {}]   ;;  %s1395_s5 = inlined_call_operand.hbm [shape: f32[2,128], index: 5, kind: output, shape index: {0}]   ;;  %s1396_s6 = inlined_call_operand.hbm [shape: f32[2,128], index: 6, kind: output, shape index: {1}]  }
   0x1   :  { %v92_v0 = vld [vmem:[%s1391_s1 + $0x20] sm:$0xf]  ;;  %v91_v1 = vld [vmem:[%s1391_s1 + $0x18] sm:$0xff]  ;;  %v90_v2 = vld [vmem:[%s1391_s1 + $0x10] sm:$0xff] }
   0x2   :  { %729 = vmatpush.msk.msra.mxu0 %vm290_vm0, %v92_v0  ;;  %795 = vmatpush.msk.msra.mxu2 %vm290_vm0, %v92_v0  ;;  %v89_v3 = vld [vmem:[%s1391_s1 + $0x8] sm:$0xff] }
   0x3   :  { %796 = vmatpush.msk.msra.mxu3 %vm290_vm0, %v92_v0  ;;  %794 = vmatpush.msk.msra.mxu1 %vm290_vm0, %v92_v0 }
   0x4   :  { %306 = vmatpush.msra.mxu0 %v91_v1  ;;  %798 = vmatpush.msra.mxu2 %v91_v1 }
   0x5   :  { %799 = vmatpush.msra.mxu3 %v91_v1  ;;  %797 = vmatpush.msra.mxu1 %v91_v1 }
   0x6   :  { %307 = vmatpush.msra.mxu0 %v90_v2  ;;  %801 = vmatpush.msra.mxu2 %v90_v2 }
   0x7   :  { %13 = vsyncpa [#allocation5], 0  ;;  %v88_v4 = vld [vmem:[%s1391_s1] sm:$0xff]  ;;  %802 = vmatpush.msra.mxu3 %v90_v2  ;;  %800 = vmatpush.msra.mxu1 %v90_v2  ;;  %vm97_vm1 = vcmask 293888   ;;  %v54_v6 = vld [vmem:[%s1390_s0 + $0xf0] sm:$0xff]  ;;  %vm652_vm3 = vcmask 1041409  }
   0x8   :  { %308 = vmatpush.msra.mxu0 %v89_v3  ;;  %804 = vmatpush.msra.mxu2 %v89_v3  ;;  %v24_v5 = vld [vmem:[%s1390_s0] sm:$0xff]  ;;  %v71_v7 = vld [vmem:[%s1390_s0 + $0x178] sm:$0xff]  ;;  %v25_v8 = vld [vmem:[%s1390_s0 + $0x8] sm:$0xff]  ;;  %s715_s17 = sshll.u32 %s1396_s6, 4  ;;  %s870_s20 = smov [#allocation2]   ;;  %s716_s17 = int_to_ptr.hbm [resolvable:$true] %s715_s17 }
   0x9   :  { %805 = vmatpush.msra.mxu3 %v89_v3  ;;  %803 = vmatpush.msra.mxu1 %v89_v3  ;;  %v55_v9 = vld [vmem:[%s1390_s0 + $0xf8] sm:$0xff]  ;;  %v72_v10 = vld [vmem:[%s1390_s0 + $0x180] sm:$0xff]  ;;  %v26_v11 = vld [vmem:[%s1390_s0 + $0x10] sm:$0xff]  ;;  %s702_s21 = sshll.u32 %s870_s20, 4  ;;  %s704_s24 = sshll.u32 %s1395_s5, 4  ;;  %s703_s21 = int_to_ptr.vmem [resolvable:$true] %s702_s21  ;;  %s705_s24 = int_to_ptr.hbm [resolvable:$true] %s704_s24 }
   0xa   :  { %309 = vmatpush.msra.mxu0 %v88_v4  ;;  %807 = vmatpush.msra.mxu2 %v88_v4  ;;  %v56_v12 = vld [vmem:[%s1390_s0 + $0x100] sm:$0xff]  ;;  %v73_v13 = vld [vmem:[%s1390_s0 + $0x188] sm:$0xff]  ;;  %v27_v14 = vld [vmem:[%s1390_s0 + $0x18] sm:$0xff] }
   0xb   :  { %730 = vmatmul.msk.f32.vlgmr.msra.gmra.mxu0 %vm97_vm1, %v24_v5  ;;  %760 = vmatmul.msk.f32.vlgmr.msra.gmra.mxu2 %vm97_vm1, %v54_v6  ;;  %v57_v15 = vld [vmem:[%s1390_s0 + $0x108] sm:$0xff]  ;;  %v74_v17 = vld [vmem:[%s1390_s0 + $0x190] sm:$0xff]  ;;  %v28_v18 = vld [vmem:[%s1390_s0 + $0x20] sm:$0xff] }
   0xc   :  { %808 = vmatpush.msra.mxu3 %v88_v4  ;;  %806 = vmatpush.msra.mxu1 %v88_v4  ;;  %v41_v16 = vld [vmem:[%s1390_s0 + $0x88] sm:$0xff]  ;;  %v58_v19 = vld [vmem:[%s1390_s0 + $0x110] sm:$0xff]  ;;  %v75_v21 = vld [vmem:[%s1390_s0 + $0x198] sm:$0xff] }
   0xd   :  { %777 = vmatmul.msk.f32.vlgmr.msra.gmra.mxu3 %vm97_vm1, %v71_v7  ;;  %747 = vmatmul.msk.f32.vlgmr.msra.gmra.mxu1 %vm97_vm1, %v41_v16  ;;  %v42_v20 = vld [vmem:[%s1390_s0 + $0x90] sm:$0xff]  ;;  %v29_v22 = vld [vmem:[%s1390_s0 + $0x28] sm:$0xff]  ;;  %v59_v23 = vld [vmem:[%s1390_s0 + $0x118] sm:$0xff] }
   0xe   :  { %v43_v24 = vld [vmem:[%s1390_s0 + $0x98] sm:$0xff]  ;;  %v76_v25 = vld [vmem:[%s1390_s0 + $0x1a0] sm:$0xff]  ;;  %v30_v26 = vld [vmem:[%s1390_s0 + $0x30] sm:$0xff] }
   0xf   :  { %v60_v27 = vld [vmem:[%s1390_s0 + $0x120] sm:$0xff]  ;;  %v77_v29 = vld [vmem:[%s1390_s0 + $0x1a8] sm:$0xff]  ;;  %v31_v30 = vld [vmem:[%s1390_s0 + $0x38] sm:$0xff] }
  0x10   :  { %v44_v28 = vld [vmem:[%s1390_s0 + $0xa0] sm:$0xff]  ;;  %v61_v31 = vld [vmem:[%s1390_s0 + $0x128] sm:$0xff]  ;;  %v78_v33 = vld [vmem:[%s1390_s0 + $0x1b0] sm:$0xff] }
  0x11   :  { %v45_v32 = vld [vmem:[%s1390_s0 + $0xa8] sm:$0xff]  ;;  %v32_v34 = vld [vmem:[%s1390_s0 + $0x40] sm:$0xff]  ;;  %v62_v35 = vld [vmem:[%s1390_s0 + $0x130] sm:$0xff] }
  0x12   :  { %v46_v36 = vld [vmem:[%s1390_s0 + $0xb0] sm:$0xff]  ;;  %v79_v37 = vld [vmem:[%s1390_s0 + $0x1b8] sm:$0xff]  ;;  %v33_v38 = vld [vmem:[%s1390_s0 + $0x48] sm:$0xff] }
  0x13   :  { %731 = vmatmul.msk.f32.gmra.mxu0 %vm97_vm1, %v25_v8  ;;  %761 = vmatmul.msk.f32.gmra.mxu2 %vm97_vm1, %v55_v9  ;;  %v63_v39 = vld [vmem:[%s1390_s0 + $0x138] sm:$0xff]  ;;  %v80_v41 = vld [vmem:[%s1390_s0 + $0x1c0] sm:$0xff]  ;;  %v34_v42 = vld [vmem:[%s1390_s0 + $0x50] sm:$0xff] }
  0x14   :  { %v47_v40 = vld [vmem:[%s1390_s0 + $0xb8] sm:$0xff]  ;;  %v64_v43 = vld [vmem:[%s1390_s0 + $0x140] sm:$0xff]  ;;  %v81_v45 = vld [vmem:[%s1390_s0 + $0x1c8] sm:$0xff] }
  0x15   :  { %778 = vmatmul.msk.f32.gmra.mxu3 %vm97_vm1, %v72_v10  ;;  %748 = vmatmul.msk.f32.gmra.mxu1 %vm97_vm1, %v42_v20  ;;  %v48_v44 = vld [vmem:[%s1390_s0 + $0xc0] sm:$0xff]  ;;  %v35_v46 = vld [vmem:[%s1390_s0 + $0x58] sm:$0xff]  ;;  %v65_v47 = vld [vmem:[%s1390_s0 + $0x148] sm:$0xff] }
  0x16   :  { %v49_v48 = vld [vmem:[%s1390_s0 + $0xc8] sm:$0xff]  ;;  %v82_v49 = vld [vmem:[%s1390_s0 + $0x1d0] sm:$0xff]  ;;  %v36_v50 = vld [vmem:[%s1390_s0 + $0x60] sm:$0xff] }
  0x17   :  { %v66_v51 = vld [vmem:[%s1390_s0 + $0x150] sm:$0xff]  ;;  %v83_v53 = vld [vmem:[%s1390_s0 + $0x1d8] sm:$0xff]  ;;  %v37_v54 = vld [vmem:[%s1390_s0 + $0x68] sm:$0xff] }
  0x18   :  { %v50_v52 = vld [vmem:[%s1390_s0 + $0xd0] sm:$0xff]  ;;  %v67_v55 = vld [vmem:[%s1390_s0 + $0x158] sm:$0xff]  ;;  %v84_v57 = vld [vmem:[%s1390_s0 + $0x1e0] sm:$0xff] }
  0x19   :  { %v51_v56 = vld [vmem:[%s1390_s0 + $0xd8] sm:$0xff]  ;;  %v38_v58 = vld [vmem:[%s1390_s0 + $0x70] sm:$0xff]  ;;  %v68_v59 = vld [vmem:[%s1390_s0 + $0x160] sm:$0xff] }
  0x1a   :  { %v52_v60 = vld [vmem:[%s1390_s0 + $0xe0] sm:$0xff]  ;;  %v85_v61 = vld [vmem:[%s1390_s0 + $0x1e8] sm:$0xff]  ;;  %v39_v62 = vld [vmem:[%s1390_s0 + $0x78] sm:$0xff] }
  0x1b   :  { %732 = vmatmul.msk.f32.gmra.mxu0 %vm97_vm1, %v26_v11  ;;  %762 = vmatmul.msk.f32.gmra.mxu2 %vm97_vm1, %v56_v12  ;;  %v69_v63 = vld [vmem:[%s1390_s0 + $0x168] sm:$0xff]  ;;  %v86_v1 = vld [vmem:[%s1390_s0 + $0x1f0] sm:$0xff]  ;;  %v40_v3 = vld [vmem:[%s1390_s0 + $0x80] sm:$0xff] }
  0x1c   :  { %v53_v0 = vld [vmem:[%s1390_s0 + $0xe8] sm:$0xff]  ;;  %v70_v4 = vld [vmem:[%s1390_s0 + $0x170] sm:$0xff]  ;;  %v1174_v5 = vld [vmem:[%s1392_s2] ss:$0 sm:$0xff] }
  0x1d   :  { %779 = vmatmul.msk.f32.gmra.mxu3 %vm97_vm1, %v73_v13  ;;  %749 = vmatmul.msk.f32.gmra.mxu1 %vm97_vm1, %v43_v24  ;;  %v87_v6 = vld [vmem:[%s1390_s0 + $0x1f8] sm:$0xff] }
  0x23   :  { %733 = vmatmul.msk.f32.gmra.mxu0 %vm97_vm1, %v27_v14  ;;  %763 = vmatmul.msk.f32.gmra.mxu2 %vm97_vm1, %v57_v15 }
  0x25   :  { %780 = vmatmul.msk.f32.gmra.mxu3 %vm97_vm1, %v74_v17  ;;  %750 = vmatmul.msk.f32.gmra.mxu1 %vm97_vm1, %v44_v28 }
  0x2b   :  { %734 = vmatmul.msk.f32.gmra.mxu0 %vm97_vm1, %v28_v18  ;;  %764 = vmatmul.msk.f32.gmra.mxu2 %vm97_vm1, %v58_v19 }
  0x2d   :  { %781 = vmatmul.msk.f32.gmra.mxu3 %vm97_vm1, %v75_v21  ;;  %751 = vmatmul.msk.f32.gmra.mxu1 %vm97_vm1, %v45_v32 }
  0x33   :  { %735 = vmatmul.msk.f32.gmra.mxu0 %vm97_vm1, %v29_v22  ;;  %765 = vmatmul.msk.f32.gmra.mxu2 %vm97_vm1, %v59_v23 }
  0x35   :  { %782 = vmatmul.msk.f32.gmra.mxu3 %vm97_vm1, %v76_v25  ;;  %752 = vmatmul.msk.f32.gmra.mxu1 %vm97_vm1, %v46_v36 }
  0x3b   :  { %736 = vmatmul.msk.f32.gmra.mxu0 %vm97_vm1, %v30_v26  ;;  %766 = vmatmul.msk.f32.gmra.mxu2 %vm97_vm1, %v60_v27 }
  0x3d   :  { %783 = vmatmul.msk.f32.gmra.mxu3 %vm97_vm1, %v77_v29  ;;  %753 = vmatmul.msk.f32.gmra.mxu1 %vm97_vm1, %v47_v40 }
  0x43   :  { %737 = vmatmul.msk.f32.gmra.mxu0 %vm97_vm1, %v31_v30  ;;  %767 = vmatmul.msk.f32.gmra.mxu2 %vm97_vm1, %v61_v31 }
  0x45   :  { %784 = vmatmul.msk.f32.gmra.mxu3 %vm97_vm1, %v78_v33  ;;  %754 = vmatmul.msk.f32.gmra.mxu1 %vm97_vm1, %v48_v44 }
  0x4b   :  { %738 = vmatmul.msk.f32.gmra.mxu0 %vm97_vm1, %v32_v34  ;;  %768 = vmatmul.msk.f32.gmra.mxu2 %vm97_vm1, %v62_v35 }
  0x4d   :  { %785 = vmatmul.msk.f32.gmra.mxu3 %vm97_vm1, %v79_v37  ;;  %755 = vmatmul.msk.f32.gmra.mxu1 %vm97_vm1, %v49_v48 }
  0x53   :  { %739 = vmatmul.msk.f32.gmra.mxu0 %vm97_vm1, %v33_v38  ;;  %769 = vmatmul.msk.f32.gmra.mxu2 %vm97_vm1, %v63_v39 }
  0x55   :  { %786 = vmatmul.msk.f32.gmra.mxu3 %vm97_vm1, %v80_v41  ;;  %756 = vmatmul.msk.f32.gmra.mxu1 %vm97_vm1, %v50_v52 }
  0x5b   :  { %740 = vmatmul.msk.f32.gmra.mxu0 %vm97_vm1, %v34_v42  ;;  %770 = vmatmul.msk.f32.gmra.mxu2 %vm97_vm1, %v64_v43 }
  0x5d   :  { %787 = vmatmul.msk.f32.gmra.mxu3 %vm97_vm1, %v81_v45  ;;  %757 = vmatmul.msk.f32.gmra.mxu1 %vm97_vm1, %v51_v56 }
  0x63   :  { %741 = vmatmul.msk.f32.gmra.mxu0 %vm97_vm1, %v35_v46  ;;  %771 = vmatmul.msk.f32.gmra.mxu2 %vm97_vm1, %v65_v47 }
  0x65   :  { %788 = vmatmul.msk.f32.gmra.mxu3 %vm97_vm1, %v82_v49  ;;  %758 = vmatmul.msk.f32.gmra.mxu1 %vm97_vm1, %v52_v60  ;;  %v670_v60 = vld [vmem:[%s1393_s3 + $0x70] sm:$0xff] }
  0x6b   :  { %742 = vmatmul.msk.f32.gmra.mxu0 %vm97_vm1, %v36_v50  ;;  %772 = vmatmul.msk.f32.gmra.mxu2 %vm97_vm1, %v66_v51 }
  0x6d   :  { %789 = vmatmul.msk.f32.gmra.mxu3 %vm97_vm1, %v83_v53  ;;  %759 = vmatmul.msk.f32.gmra.mxu1 %vm97_vm1, %v53_v0 }
  0x73   :  { %743 = vmatmul.msk.f32.gmra.mxu0 %vm97_vm1, %v37_v54  ;;  %773 = vmatmul.msk.f32.gmra.mxu2 %vm97_vm1, %v67_v55 }
  0x75   :  { %790 = vmatmul.msk.f32.gmra.mxu3 %vm97_vm1, %v84_v57 }
  0x7b   :  { %744 = vmatmul.msk.f32.gmra.mxu0 %vm97_vm1, %v38_v58  ;;  %774 = vmatmul.msk.f32.gmra.mxu2 %vm97_vm1, %v68_v59  ;;  %v671_v59 = vld [vmem:[%s1393_s3 + $0x78] sm:$0xff] }
  0x7c   :  { %676 = vmatpush.msrb.mxu1 %v671_v59 }
  0x7d   :  { %791 = vmatmul.msk.f32.gmra.mxu3 %vm97_vm1, %v85_v61 }
  0x7e   :  { %677 = vmatpush.msrb.mxu1 %v670_v60 }
  0x83   :  { %745 = vmatmul.msk.f32.gmra.mxu0 %vm97_vm1, %v39_v62  ;;  %775 = vmatmul.msk.f32.gmra.mxu2 %vm97_vm1, %v69_v63 }
  0x85   :  { %792 = vmatmul.msk.f32.gmra.mxu3 %vm97_vm1, %v86_v1  ;;  %v669_v1 = vld [vmem:[%s1393_s3 + $0x68] sm:$0xff] }
  0x86   :  { %678 = vmatpush.msrb.mxu1 %v669_v1 }
  0x88   :  { %v311_v2 = vpop.f32.mrf.mxu0 }
  0x89   :  { %v312_v7 = vadd.f32 %v1174_v5, %v311_v2 }
  0x8a   :  { %v1196_v26 = vpop.f32.mrf.mxu1 }
  0x8b   :  { %746 = vmatmul.msk.f32.gmra.mxu0 %vm97_vm1, %v40_v3  ;;  %776 = vmatmul.msk.f32.gmra.mxu2 %vm97_vm1, %v70_v4  ;;  %v503_v11 = vmax.f32 %v312_v7, 0.0 }
  0x8d   :  { %793 = vmatmul.msk.f32.gmra.mxu3 %vm97_vm1, %v87_v6  ;;  %v668_v6 = vld [vmem:[%s1393_s3 + $0x60] sm:$0xff] }
  0x8e   :  { %v1183_v8 = vpop.f32.mrf.mxu2  ;;  %679 = vmatpush.msrb.mxu1 %v668_v6 }
  0x90   :  { %v314_v9 = vpop.f32.mrf.mxu0  ;;  %v1185_v10 = vpop.f32.mrf.mxu3 }
  0x91   :  { %v315_v12 = vadd.f32 %v1174_v5, %v314_v9 }
  0x92   :  { %v1203_v40 = vpop.f32.mrf.mxu1 }
  0x93   :  { %v504_v13 = vmax.f32 %v315_v12, 0.0 }
  0x95   :  { %v567_v14 = vadd.f32 %v504_v13, %v503_v11  ;;  %v667_v13 = vld [vmem:[%s1393_s3 + $0x58] sm:$0xff] }
  0x96   :  { %v1188_v15 = vpop.f32.mrf.mxu2  ;;  %680 = vmatpush.msrb.mxu1 %v667_v13 }
  0x98   :  { %v317_v16 = vpop.f32.mrf.mxu0  ;;  %v1190_v17 = vpop.f32.mrf.mxu3 }
  0x99   :  { %v318_v18 = vadd.f32 %v1174_v5, %v317_v16 }
  0x9a   :  { %v1210_v52 = vpop.f32.mrf.mxu1 }
  0x9b   :  { %v505_v19 = vmax.f32 %v318_v18, 0.0 }
  0x9d   :  { %v568_v20 = vadd.f32 %v567_v14, %v505_v19  ;;  %v666_v19 = vld [vmem:[%s1393_s3 + $0x50] sm:$0xff] }
  0x9e   :  { %v407_v21 = vpop.f32.mrf.mxu2  ;;  %681 = vmatpush.msrb.mxu1 %v666_v19 }
  0x9f   :  { %v408_v27 = vadd.f32 %v1174_v5, %v407_v21  ;;  %v665_v21 = vld [vmem:[%s1393_s3 + $0x48] sm:$0xff] }
  0xa0   :  { %v320_v22 = vpop.f32.mrf.mxu0  ;;  %v1193_v23 = vpop.f32.mrf.mxu3  ;;  %682 = vmatpush.msrb.mxu1 %v665_v21 }
  0xa1   :  { %v321_v24 = vadd.f32 %v1174_v5, %v320_v22  ;;  %v535_v33 = vmax.f32 %v408_v27, 0.0 }
  0xa2   :  { %v1216_v58 = vpop.f32.mrf.mxu1 }
  0xa3   :  { %v506_v25 = vmax.f32 %v321_v24, 0.0 }
  0xa5   :  { %v569_v28 = vadd.f32 %v568_v20, %v506_v25 }
  0xa6   :  { %v410_v29 = vpop.f32.mrf.mxu2 }
  0xa7   :  { %v411_v30 = vadd.f32 %v1174_v5, %v410_v29 }
  0xa8   :  { %v323_v31 = vpop.f32.mrf.mxu0  ;;  %v1200_v32 = vpop.f32.mrf.mxu3 }
  0xa9   :  { %v536_v34 = vmax.f32 %v411_v30, 0.0  ;;  %v324_v35 = vadd.f32 %v1174_v5, %v323_v31 }
  0xaa   :  { %v1226_v0 = vpop.f32.mrf.mxu1 }
  0xab   :  { %v604_v36 = vadd.f32 %v536_v34, %v535_v33  ;;  %v507_v37 = vmax.f32 %v324_v35, 0.0 }
  0xad   :  { %v570_v38 = vadd.f32 %v569_v28, %v507_v37 }
  0xae   :  { %v413_v39 = vpop.f32.mrf.mxu2 }
  0xaf   :  { %v414_v41 = vadd.f32 %v1174_v5, %v413_v39 }
  0xb0   :  { %v326_v42 = vpop.f32.mrf.mxu0  ;;  %v1207_v45 = vpop.f32.mrf.mxu3 }
  0xb1   :  { %v537_v43 = vmax.f32 %v414_v41, 0.0  ;;  %v327_v44 = vadd.f32 %v1174_v5, %v326_v42 }
  0xb2   :  { %v1236_v9 = vpop.f32.mrf.mxu1 }
  0xb3   :  { %v605_v46 = vadd.f32 %v604_v36, %v537_v43  ;;  %v508_v47 = vmax.f32 %v327_v44, 0.0 }
  0xb5   :  { %v571_v48 = vadd.f32 %v570_v38, %v508_v47 }
  0xb6   :  { %v416_v49 = vpop.f32.mrf.mxu2 }
  0xb7   :  { %v417_v50 = vadd.f32 %v1174_v5, %v416_v49 }
  0xb8   :  { %v329_v51 = vpop.f32.mrf.mxu0  ;;  %v1214_v55 = vpop.f32.mrf.mxu3 }
  0xb9   :  { %v538_v53 = vmax.f32 %v417_v50, 0.0  ;;  %v330_v30 = vadd.f32 %v1174_v5, %v329_v51 }
  0xba   :  { %v1243_v18 = vpop.f32.mrf.mxu1 }
  0xbb   :  { %v1212_v54 = vadd.f32 %v605_v46, %v538_v53  ;;  %v509_v34 = vmax.f32 %v330_v30, 0.0 }
  0xbd   :  { %v572_v44 = vadd.f32 %v571_v48, %v509_v34 }
  0xbe   :  { %v419_v56 = vpop.f32.mrf.mxu2 }
  0xbf   :  { %v420_v36 = vadd.f32 %v1174_v5, %v419_v56 }
  0xc0   :  { %v332_v57 = vpop.f32.mrf.mxu0  ;;  %v1224_v62 = vpop.f32.mrf.mxu3 }
  0xc1   :  { %v333_v31 = vadd.f32 %v1174_v5, %v332_v57  ;;  %v539_v49 = vmax.f32 %v420_v36, 0.0 }
  0xc2   :  { %v1253_v25 = vpop.f32.mrf.mxu1 }
  0xc3   :  { %v510_v38 = vmax.f32 %v333_v31, 0.0  ;;  %v607_v1 = vadd.f32 %v1212_v54, %v539_v49  ;;  %v664_v54 = vld [vmem:[%s1393_s3 + $0x40] sm:$0xff] }
  0xc4   :  { %683 = vmatpush.msrb.mxu1 %v664_v54 }
  0xc5   :  { %v573_v51 = vadd.f32 %v572_v44, %v510_v38 }
  0xc6   :  { %v422_v61 = vpop.f32.mrf.mxu2 }
  0xc7   :  { %v423_v41 = vadd.f32 %v1174_v5, %v422_v61 }
  0xc8   :  { %v335_v63 = vpop.f32.mrf.mxu0  ;;  %v1231_v4 = vpop.f32.mrf.mxu3 }
  0xc9   :  { %v336_v35 = vadd.f32 %v1174_v5, %v335_v63  ;;  %v540_v57 = vmax.f32 %v423_v41, 0.0 }
  0xca   :  { %v1259_v33 = vpop.f32.mrf.mxu1 }
  0xcb   :  { %v511_v46 = vmax.f32 %v336_v35, 0.0 }
  0xcd   :  { %v574_v60 = vadd.f32 %v573_v51, %v511_v46 }
  0xce   :  { %v425_v2 = vpop.f32.mrf.mxu2 }
  0xcf   :  { %v426_v50 = vadd.f32 %v1174_v5, %v425_v2 }
  0xd0   :  { %v338_v3 = vpop.f32.mrf.mxu0  ;;  %v1238_v12 = vpop.f32.mrf.mxu3 }
  0xd1   :  { %v339_v39 = vadd.f32 %v1174_v5, %v338_v3  ;;  %v541_v48 = vmax.f32 %v426_v50, 0.0 }
  0xd3   :  { %v512_v53 = vmax.f32 %v339_v39, 0.0 }
  0xd5   :  { %v575_v2 = vadd.f32 %v574_v60, %v512_v53 }
  0xd6   :  { %v428_v7 = vpop.f32.mrf.mxu2 }
  0xd7   :  { %v429_v59 = vadd.f32 %v1174_v5, %v428_v7 }
  0xd8   :  { %v341_v11 = vpop.f32.mrf.mxu0  ;;  %v1248_v20 = vpop.f32.mrf.mxu3 }
  0xd9   :  { %v342_v47 = vadd.f32 %v1174_v5, %v341_v11  ;;  %v1274_v11 = vpop.f32.mrf.mxu1  ;;  %v542_v21 = vmax.f32 %v429_v59, 0.0  ;;  %v363_v59 = vadd.f32 %v1174_v5, %v1196_v26  ;;  %v369_v26 = vadd.f32 %v1174_v5, %v1210_v52 }
  0xdb   :  { %v513_v63 = vmax.f32 %v342_v47, 0.0 }
  0xdd   :  { %v576_v31 = vadd.f32 %v575_v2, %v513_v63 }
  0xde   :  { %v431_v14 = vpop.f32.mrf.mxu2 }
  0xdf   :  { %v432_v3 = vadd.f32 %v1174_v5, %v431_v14 }
  0xe0   :  { %v344_v16 = vpop.f32.mrf.mxu0  ;;  %v1255_v28 = vpop.f32.mrf.mxu3 }
  0xe1   :  { %v345_v56 = vadd.f32 %v1174_v5, %v344_v16  ;;  %v608_v16 = vadd.f32 %v607_v1, %v540_v57  ;;  %v543_v35 = vmax.f32 %v432_v3, 0.0  ;;  %v1290_v63 = vpop.f32.mrf.mxu1  ;;  %v366_v3 = vadd.f32 %v1174_v5, %v1203_v40 }
  0xe2   :  { %v453_v40 = vadd.f32 %v1174_v5, %v1185_v10  ;;  %v456_v10 = vadd.f32 %v1174_v5, %v1190_v17  ;;  %v378_v17 = vadd.f32 %v1174_v5, %v1236_v9  ;;  %v465_v9 = vadd.f32 %v1174_v5, %v1207_v45 }
  0xe3   :  { %v514_v13 = vmax.f32 %v345_v56, 0.0  ;;  %v609_v14 = vadd.f32 %v608_v16, %v541_v48 }
  0xe4   :  { %v554_v45 = vmax.f32 %v465_v9, 0.0 }
  0xe5   :  { %v577_v38 = vadd.f32 %v576_v31, %v514_v13  ;;  %v610_v41 = vadd.f32 %v609_v14, %v542_v21  ;;  %v520_v21 = vmax.f32 %v363_v59, 0.0  ;;  %v372_v14 = vadd.f32 %v1174_v5, %v1216_v58 }
  0xe6   :  { %v434_v22 = vpop.f32.mrf.mxu2  ;;  %v375_v58 = vadd.f32 %v1174_v5, %v1226_v0  ;;  %v659_v0 = vld [vmem:[%s1393_s3 + $0x18] sm:$0xff]  ;;  %v462_v59 = vadd.f32 %v1174_v5, %v1200_v32 }
  0xe7   :  { %v435_v7 = vadd.f32 %v1174_v5, %v434_v22  ;;  %v611_v49 = vadd.f32 %v610_v41, %v543_v35 }
  0xe8   :  { %v347_v24 = vpop.f32.mrf.mxu0  ;;  %v1265_v43 = vpop.f32.mrf.mxu3 }
  0xe9   :  { %v348_v61 = vadd.f32 %v1174_v5, %v347_v24  ;;  %v544_v44 = vmax.f32 %v435_v7, 0.0 }
  0xeb   :  { %v515_v34 = vmax.f32 %v348_v61, 0.0 }
  0xed   :  { %v578_v46 = vadd.f32 %v577_v38, %v515_v34  ;;  %v663_v34 = vld [vmem:[%s1393_s3 + $0x38] sm:$0xff] }
  0xee   :  { %v437_v27 = vpop.f32.mrf.mxu2  ;;  %684 = vmatpush.msrb.mxu1 %v663_v34 }
  0xf0   :  { %v350_v29 = vpop.f32.mrf.mxu0  ;;  %v1282_v36 = vpop.f32.mrf.mxu3 }
  0xf1   :  { %v351_v19 = vadd.f32 %v1174_v5, %v350_v29  ;;  %v438_v29 = vadd.f32 %v1174_v5, %v437_v27  ;;  %v612_v27 = vadd.f32 %v611_v49, %v544_v44  ;;  %v459_v49 = vadd.f32 %v1174_v5, %v1193_v23 }
  0xf2   :  { %v381_v23 = vadd.f32 %v1174_v5, %v1243_v18  ;;  %v387_v18 = vadd.f32 %v1174_v5, %v1259_v33 }
  0xf3   :  { %v516_v39 = vmax.f32 %v351_v19, 0.0  ;;  %v545_v51 = vmax.f32 %v438_v29, 0.0  ;;  %v662_v29 = vld [vmem:[%s1393_s3 + $0x30] sm:$0xff] }
  0xf4   :  { %685 = vmatpush.msrb.mxu1 %v662_v29 }
  0xf5   :  { %v579_v53 = vadd.f32 %v578_v46, %v516_v39  ;;  %v613_v2 = vadd.f32 %v612_v27, %v545_v51  ;;  %v661_v39 = vld [vmem:[%s1393_s3 + $0x28] sm:$0xff]  ;;  %v523_v51 = vmax.f32 %v372_v14, 0.0  ;;  %v524_v27 = vmax.f32 %v375_v58, 0.0 }
  0xf6   :  { %v440_v37 = vpop.f32.mrf.mxu2  ;;  %686 = vmatpush.msrb.mxu1 %v661_v39  ;;  %v480_v58 = vadd.f32 %v1174_v5, %v1248_v20 }
  0xf8   :  { %v353_v42 = vpop.f32.mrf.mxu0  ;;  %v1298_v16 = vpop.f32.mrf.mxu3 }
  0xf9   :  { %v354_v24 = vadd.f32 %v1174_v5, %v353_v42  ;;  %v441_v42 = vadd.f32 %v1174_v5, %v440_v37  ;;  %v492_v9 = vadd.f32 %v1174_v5, %v1298_v16 }
  0xfb   :  { %v517_v47 = vmax.f32 %v354_v24, 0.0  ;;  %v546_v61 = vmax.f32 %v441_v42, 0.0  ;;  %v521_v24 = vmax.f32 %v366_v3, 0.0  ;;  %v660_v42 = vld [vmem:[%s1393_s3 + $0x20] sm:$0xff]  ;;  %v384_v3 = vadd.f32 %v1174_v5, %v1253_v25 }
  0xfc   :  { %687 = vmatpush.msrb.mxu1 %v660_v42  ;;  %v390_v25 = vadd.f32 %v1174_v5, %v1274_v11 }
  0xfd   :  { %v580_v1 = vadd.f32 %v579_v53, %v517_v47  ;;  %v614_v7 = vadd.f32 %v613_v2, %v546_v61  ;;  %v550_v47 = vmax.f32 %v453_v40, 0.0 }
  0xfe   :  { %v443_v6 = vpop.f32.mrf.mxu2  ;;  %688 = vmatpush.msrb.mxu1 %v659_v0  ;;  %v529_v11 = vmax.f32 %v390_v25, 0.0  ;;  %v559_v0 = vmax.f32 %v480_v58, 0.0 }
  0xff   :  { %v444_v56 = vadd.f32 %v1174_v5, %v443_v6 }
 0x100   :  { %v356_v30 = vpop.f32.mrf.mxu0 }
 0x101   :  { %v357_v22 = vadd.f32 %v1174_v5, %v356_v30  ;;  %v547_v13 = vmax.f32 %v444_v56, 0.0 }
 0x103   :  { %v518_v57 = vmax.f32 %v357_v22, 0.0  ;;  %v615_v52 = vadd.f32 %v614_v7, %v547_v13  ;;  %v522_v22 = vmax.f32 %v369_v26, 0.0  ;;  %v468_v13 = vadd.f32 %v1174_v5, %v1214_v55 }
 0x104   :  { %v471_v7 = vadd.f32 %v1174_v5, %v1224_v62  ;;  %v474_v55 = vadd.f32 %v1174_v5, %v1231_v4  ;;  %v658_v4 = vld [vmem:[%s1393_s3 + $0x10] sm:$0xff] }
 0x105   :  { %v581_v6 = vadd.f32 %v580_v1, %v518_v57  ;;  %v551_v57 = vmax.f32 %v456_v10, 0.0  ;;  %v552_v1 = vmax.f32 %v459_v49, 0.0  ;;  %v555_v40 = vmax.f32 %v468_v13, 0.0  ;;  %689 = vmatpush.msrb.mxu1 %v658_v4 }
 0x106   :  { %v446_v50 = vpop.f32.mrf.mxu2  ;;  %v556_v62 = vmax.f32 %v471_v7, 0.0  ;;  %v402_v49 = vadd.f32 %v1174_v5, %v1183_v8 }
 0x107   :  { %v447_v48 = vadd.f32 %v1174_v5, %v446_v50  ;;  %v395_v50 = vpop.f32.mrf.mxu1 }
 0x108   :  { %v359_v60 = vpop.f32.mrf.mxu0 }
 0x109   :  { %v360_v37 = vadd.f32 %v1174_v5, %v359_v60  ;;  %v548_v30 = vmax.f32 %v447_v48, 0.0  ;;  %v1334_v48 = vpop.f32.mrf.mxu3 }
 0x10b   :  { %v519_v19 = vmax.f32 %v360_v37, 0.0  ;;  %v616_v41 = vadd.f32 %v615_v52, %v548_v30  ;;  %v525_v37 = vmax.f32 %v378_v17, 0.0  ;;  %v527_v30 = vmax.f32 %v384_v3, 0.0 }
 0x10c   :  { %v393_v52 = vadd.f32 %v1174_v5, %v1290_v63  ;;  %v557_v63 = vmax.f32 %v474_v55, 0.0 }
 0x10d   :  { %v582_v31 = vadd.f32 %v581_v6, %v519_v19  ;;  %v553_v6 = vmax.f32 %v462_v59, 0.0  ;;  %v526_v19 = vmax.f32 %v381_v23, 0.0  ;;  %v533_v23 = vmax.f32 %v402_v49, 0.0 }
 0x10e   :  { %v449_v54 = vpop.f32.mrf.mxu2 }
 0x10f   :  { %v583_v35 = vadd.f32 %v582_v31, %v520_v21  ;;  %v450_v38 = vadd.f32 %v1174_v5, %v449_v54  ;;  %v398_v33 = vpop.f32.mrf.mxu1 }
 0x110   :  { %v399_v10 = vadd.f32 %v1174_v5, %v398_v33 }
 0x111   :  { %v584_v44 = vadd.f32 %v583_v35, %v521_v24  ;;  %v549_v46 = vmax.f32 %v450_v38, 0.0  ;;  %v528_v24 = vmax.f32 %v387_v18, 0.0  ;;  %v396_v35 = vadd.f32 %v1174_v5, %v395_v50 }
 0x112   :  { %v477_v38 = vadd.f32 %v1174_v5, %v1238_v12  ;;  %v483_v50 = vadd.f32 %v1174_v5, %v1255_v28  ;;  %v489_v28 = vadd.f32 %v1174_v5, %v1282_v36  ;;  %v495_v18 = vadd.f32 %v1174_v5, %v1334_v48 }
 0x113   :  { %v585_v53 = vadd.f32 %v584_v44, %v522_v22  ;;  %v617_v56 = vadd.f32 %v616_v41, %v549_v46  ;;  %v657_v22 = vld [vmem:[%s1393_s3 + $0x8] sm:$0xff]  ;;  %v497_v41 = vpop.f32.mrf.mxu3  ;;  %v530_v46 = vmax.f32 %v393_v52, 0.0  ;;  %v531_v42 = vmax.f32 %v396_v35, 0.0 }
 0x114   :  { %690 = vmatpush.msrb.mxu1 %v657_v22  ;;  %v560_v8 = vmax.f32 %v483_v50, 0.0 }
 0x115   :  { %v586_v60 = vadd.f32 %v585_v53, %v523_v51  ;;  %v618_v61 = vadd.f32 %v617_v56, %v550_v47  ;;  %v656_v47 = vld [vmem:[%s1393_s3] sm:$0xff]  ;;  %v558_v51 = vmax.f32 %v477_v38, 0.0  ;;  %v532_v53 = vmax.f32 %v399_v10, 0.0  ;;  %s869_s3 = smov [#allocation4]  }
 0x116   :  { %v405_v56 = vadd.f32 %v1174_v5, %v1188_v15  ;;  %691 = vmatpush.msrb.mxu1 %v656_v47  ;;  %s713_s14 = sshll.u32 %s869_s3, 4  ;;  %s714_s14 = int_to_ptr.vmem [resolvable:$true] %s713_s14 }
 0x117   :  { %v587_v2 = vadd.f32 %v586_v60, %v524_v27  ;;  %v619_v32 = vadd.f32 %v618_v61, %v551_v57  ;;  %v486_v57 = vadd.f32 %v1174_v5, %v1265_v43  ;;  %v562_v43 = vmax.f32 %v489_v28, 0.0 }
 0x118   :  { %v534_v15 = vmax.f32 %v405_v56, 0.0 }
 0x119   :  { %v588_v26 = vadd.f32 %v587_v2, %v525_v37  ;;  %v620_v21 = vadd.f32 %v619_v32, %v552_v1  ;;  %v868_v1 = vmov 256.0   ;;  %v561_v37 = vmax.f32 %v486_v57, 0.0 }
 0x11a   :  { %814 = vrcp.f32 %v868_v1 }
 0x11b   :  { %v589_v31 = vadd.f32 %v588_v26, %v526_v19  ;;  %v621_v34 = vadd.f32 %v620_v21, %v553_v6  ;;  %v500_v32 = vpop.f32.mrf.mxu3  ;;  %v563_v19 = vmax.f32 %v492_v9, 0.0 }
 0x11c   :  { %v501_v7 = vadd.f32 %v1174_v5, %v500_v32 }
 0x11d   :  { %v590_v54 = vadd.f32 %v589_v31, %v527_v30  ;;  %v622_v14 = vadd.f32 %v621_v34, %v554_v45  ;;  %v498_v45 = vadd.f32 %v1174_v5, %v497_v41  ;;  %v564_v30 = vmax.f32 %v495_v18, 0.0 }
 0x11e   :  { %v566_v55 = vmax.f32 %v501_v7, 0.0 }
 0x11f   :  { %v591_v29 = vadd.f32 %v590_v54, %v528_v24  ;;  %v623_v39 = vadd.f32 %v622_v14, %v555_v40  ;;  %v565_v40 = vmax.f32 %v498_v45, 0.0 }
 0x120   :  { %v815_v36 = vpop.eup %814 }
 0x121   :  { %v592_v12 = vadd.f32 %v591_v29, %v529_v11  ;;  %v624_v44 = vadd.f32 %v623_v39, %v556_v62  ;;  %v642_v31 = vmul.f32 256.0, %v815_v36  ;;  %vm646_vm2 = vweird.f32 %v815_v36 }
 0x123   :  { %v625_v17 = vadd.f32 %v624_v44, %v557_v63  ;;  %v593_v20 = vadd.f32 %v592_v12, %v530_v46  ;;  %v643_v54 = vsub.f32 1.0, %v642_v31  ;;  %v813_v12 = vld [vmem:[%s1394_s4] ss:$0 sm:$0xff] }
 0x125   :  { %v626_v59 = vadd.f32 %v625_v17, %v558_v51  ;;  %v594_v27 = vadd.f32 %v593_v20, %v531_v42  ;;  %v644_v35 = vmul.f32 %v815_v36, %v643_v54 }
 0x127   :  { %v627_v60 = vadd.f32 %v626_v59, %v559_v0  ;;  %v595_v61 = vadd.f32 %v594_v27, %v532_v53  ;;  %v645_v29 = vadd.f32 %v815_v36, %v644_v35 }
 0x129   :  { %v628_v3 = vadd.f32 %v627_v60, %v560_v8  ;;  %v596_v2 = vadd.f32 %v595_v61, %v533_v23  ;;  %v647_v4 = vsel %vm646_vm2, %v815_v36, %v645_v29 }
 0x12b   :  { %v629_v13 = vadd.f32 %v628_v3, %v561_v37  ;;  %v597_v6 = vadd.f32 %v596_v2, %v534_v15 }
 0x12d   :  { %v630_v26 = vadd.f32 %v629_v13, %v562_v43  ;;  %v598_v21 = vrot.slane %v597_v6, 4 }
 0x12f   :  { %v631_v16 = vadd.f32 %v630_v26, %v563_v19  ;;  %v599_v25 = vadd.f32 %v598_v21, %v597_v6 }
 0x131   :  { %v632_v34 = vadd.f32 %v631_v16, %v564_v30  ;;  %v600_v24 = vrot.slane %v599_v25, 2 }
 0x133   :  { %v633_v33 = vadd.f32 %v632_v34, %v565_v40  ;;  %v601_v52 = vadd.f32 %v600_v24, %v599_v25 }
 0x135   :  { %v634_v48 = vadd.f32 %v633_v33, %v566_v55  ;;  %v602_v11 = vrot.slane %v601_v52, 1 }
 0x137   :  { %v635_v14 = vrot.slane %v634_v48, 4  ;;  %v603_v10 = vadd.f32 %v602_v11, %v601_v52 }
 0x139   :  { %v636_v62 = vadd.f32 %v635_v14, %v634_v48  ;;  %v648_v63 = vmul.f32 %v647_v4, %v603_v10 }
 0x13b   :  { %v637_v38 = vrot.slane %v636_v62, 2 }
 0x13d   :  { %v638_v39 = vadd.f32 %v637_v38, %v636_v62 }
 0x13f   :  { %v639_v5 = vrot.slane %v638_v39, 1 }
 0x141   :  { %v640_v22 = vadd.f32 %v639_v5, %v638_v39 }
 0x143   :  { %v649_v58 = vmul.f32 %v647_v4, %v640_v22 }
 0x145   :  { %v653_v41 = vsel %vm652_vm3, %v649_v58, %v648_v63 }
 0x146   :  { %655 = vst [vmem:[#allocation4] sm:$0x3] %v653_v41  ;;  %692 = vmatmul.f32.vlgmr.msrb.gmra.mxu1 %v653_v41 }
 0x147   :  { %718 = dma.vmem_to_hbm [thread:$0]  %s714_s14, 32, %s716_s17, [#allocation5]  }
 0x1c3   :  { %v693_v44 = vpop.f32.mrf.mxu1 }
 0x1c4   :  { %v694_v46 = vadd.f32 %v813_v12, %v693_v44 }
 0x1c6   :  { %696 = vst [vmem:[#allocation2] sm:$0x3] %v694_v46 }
 0x1c7   :  { %707 = dma.vmem_to_hbm [thread:$0]  %s703_s21, 32, %s705_s24, [#allocation3]  }
 0x1c8   :  { %864 = dma.done.wait [#allocation3], 32  }
 0x1c9   :  { %865 = vsyncadd [#allocation3], 4294967264 }
 0x1ca   :  { %866 = dma.done.wait [#allocation5], 32  }
 0x1cb   :  { %867 = vsyncadd [#allocation5], 4294967264 }
 0x1cc   :  { %727 = vsyncpa [#allocation3], 1 }
 0x1cd   :  { %728 = vsyncpa [#allocation5], 1 }

</bundles_post_ra>
